<compile_context>
chip_gen: v5e
topology: v5e:2x2
jax: 0.10.0
libtpu: 0.0.40
codegen_flags: <defaults>
</compile_context>

<pallas_src>
import functools

import jax
import jax.numpy as jnp
from jax.experimental import pallas as pl
from jax.experimental.pallas import tpu as pltpu

_MASK_BIAS = -1e30  # baked into padded b4 action columns


def _round_up(x, m):
    return (x + m - 1) // m * m


def _actor_kernel(feature_dim, n_actions,
                  obs_ref, inv_temp_ref,
                  w1_ref, b1_ref, ln_g_ref, ln_b_ref,
                  w2_ref, b2_ref,
                  w3_ref, b3_ref,
                  w4_ref, b4_ref,
                  probs_ref):
    del n_actions  # mask is baked into b4's pad columns

    # bf16 LHS x bf16 RHS -> native MXU path; accumulate in f32.
    x = obs_ref[...].astype(jnp.bfloat16)

    # ---- trunk: Linear -> LayerNorm -> Tanh --------------------------------
    h = jnp.dot(x, w1_ref[...], preferred_element_type=jnp.float32) + b1_ref[...]

    # Pad lanes of h are exactly zero (zero-padded W1 columns / b1), so:
    #   sum_true(h)          == sum_all(h)
    #   sum_true((h - mu)^2) == sum_all((h - mu)^2) - n_pad * mu^2
    # Two-pass (centered) variance for numerical stability.
    n_pad = h.shape[-1] - feature_dim
    inv_f = jnp.float32(1.0 / feature_dim)
    mean = jnp.sum(h, axis=-1, keepdims=True) * inv_f
    c = h - mean
    ssq = jnp.sum(c * c, axis=-1, keepdims=True)
    if n_pad:
        ssq = ssq - jnp.float32(n_pad) * (mean * mean)
    var = jnp.maximum(ssq * inv_f, 0.0)
    h = c * jax.lax.rsqrt(var + jnp.float32(1e-5))
    h = h * ln_g_ref[...] + ln_b_ref[...]   # gamma/beta pad lanes are 0 -> pad h = 0
    h = jnp.tanh(h).astype(jnp.bfloat16)

    # ---- policy MLP: Linear -> ReLU -> Linear -> ReLU -> Linear ------------
    h = jnp.maximum(
        jnp.dot(h, w2_ref[...], preferred_element_type=jnp.float32) + b2_ref[...],
        0.0).astype(jnp.bfloat16)
    h = jnp.maximum(
        jnp.dot(h, w3_ref[...], preferred_element_type=jnp.float32) + b3_ref[...],
        0.0).astype(jnp.bfloat16)
    logits = jnp.dot(h, w4_ref[...], preferred_element_type=jnp.float32) + b4_ref[...]

    # ---- temperature-scaled softmax (f32, exact normalization) -------------
    # Pad action columns carry a -1e30 bias baked into b4, so exp underflows
    # to exactly 0 there; no runtime mask needed.
    scaled = logits * inv_temp_ref[...]
    m = jnp.max(scaled, axis=-1, keepdims=True)
    e = jnp.exp(scaled - m)
    denom = jnp.sum(e, axis=-1, keepdims=True)
    probs_ref[...] = (e * (jnp.float32(1.0) / denom)).astype(probs_ref.dtype)


def prepare_params(params, weight_dtype=jnp.bfloat16):
    """Pad feature axes to multiples of 128 (zeros), cast weights to bf16.

    Zero padding keeps the math exact: pad lanes of every activation are 0.
    Pad action columns of b4 get a -1e30 bias so the in-kernel softmax assigns
    them exactly zero probability (mask baked into the parameters).
    """
    K, F = params["w1"].shape
    H = params["w2"].shape[1]
    A = params["w4"].shape[1]
    Kp, Fp, Hp, Ap = (_round_up(d, 128) for d in (K, F, H, A))

    def pad2(w, r, c, fill=0.0):
        return jnp.pad(w, ((0, r - w.shape[0]), (0, c - w.shape[1])),
                       constant_values=fill)

    padded = {
        "w1": pad2(params["w1"], Kp, Fp).astype(weight_dtype),
        "b1": pad2(params["b1"], 1, Fp).astype(jnp.float32),
        "ln_g": pad2(params["ln_g"], 1, Fp).astype(jnp.float32),
        "ln_b": pad2(params["ln_b"], 1, Fp).astype(jnp.float32),
        "w2": pad2(params["w2"], Fp, Hp).astype(weight_dtype),
        "b2": pad2(params["b2"], 1, Hp).astype(jnp.float32),
        "w3": pad2(params["w3"], Hp, Hp).astype(weight_dtype),
        "b3": pad2(params["b3"], 1, Hp).astype(jnp.float32),
        "w4": pad2(params["w4"], Hp, Ap).astype(weight_dtype),
        "b4": pad2(params["b4"], 1, Ap, fill=_MASK_BIAS).astype(jnp.float32),
    }
    meta = {"repr_dim": K, "feature_dim": F, "hidden_dim": H, "n_actions": A}
    return padded, meta


def _vmem_budget_bytes():
    """~60% of this generation's VMEM; 40 MiB fallback (safe on v7x's 64 MiB)."""
    try:
        cap = int(pltpu.get_tpu_info().vmem_capacity_bytes)
        return max(min(int(0.6 * cap), 96 << 20), 24 << 20)
    except Exception:
        return 40 << 20


@functools.partial(jax.jit,
                   static_argnames=("feature_dim", "n_actions", "batch_tile"))
def discrete_actor_forward(obs, padded_params, std, *,
                           feature_dim, n_actions, batch_tile=1024):
    """obs: [B, repr_dim] f32, std: scalar -> probs [B, n_actions] f32."""
    p = padded_params
    B, K = obs.shape
    Kp, Fp = p["w1"].shape
    Hp = p["w2"].shape[1]
    Ap = p["w4"].shape[1]

    obs_item = obs.dtype.itemsize
    weights_b = sum(int(v.size) * v.dtype.itemsize for v in p.values())
    budget = _vmem_budget_bytes()

    # VMEM estimate: (double-buffered) resident weights + double-buffered
    # obs/probs tiles + activation headroom.
    def est(tb):
        return (2 * weights_b
                + 2 * tb * (Kp * obs_item + Ap * 4)
                + 4 * tb * max(Kp, Fp, Hp, Ap) * 4)

    TB = min(_round_up(B, 8), _round_up(batch_tile, 8))
    while TB > 8 and est(TB) > budget:
        TB = max(8, _round_up(TB // 2, 8))
    # >= 2 grid steps (when the batch allows) so ("parallel",) can shard the
    # batch axis across v7x's two TensorCores; no-op on v5e/v6e.
    if B >= 16 and _round_up(B, TB) // TB < 2:
        TB = max(8, _round_up((B + 1) // 2, 8))
    Bp = _round_up(B, TB)

    obs_p = obs
    if (Bp, Kp) != (B, K):
        # TODO(synk): avoid this XLA pad round-trip by choosing B as a multiple
        # of the tile and repr_dim as a multiple of 128 upstream.
        obs_p = jnp.pad(obs, ((0, Bp - B), (0, Kp - K)))

    # Temperature scalar, passed as a tiny (1,1) f32 VMEM operand.
    inv_temp = (1.0 / (jnp.asarray(std, jnp.float32) * 10.0)).reshape(1, 1)

    vmem_limit = int(min(max(2 * est(TB), 16 << 20), budget))

    kernel = functools.partial(_actor_kernel, feature_dim, n_actions)
    resident = lambda r, c: pl.BlockSpec((r, c), lambda i: (0, 0))  # noqa: E731

    probs_p = pl.pallas_call(
        kernel,
        out_shape=jax.ShapeDtypeStruct((Bp, Ap), jnp.float32),
        grid=(Bp // TB,),
        in_specs=[pl.BlockSpec((TB, Kp), lambda i: (i, 0)),   # obs (batch-tiled)
                  resident(1, 1),                             # inv_temp
                  resident(Kp, Fp), resident(1, Fp),          # w1, b1
                  resident(1, Fp), resident(1, Fp),           # ln gamma, ln beta
                  resident(Fp, Hp), resident(1, Hp),          # w2, b2
                  resident(Hp, Hp), resident(1, Hp),          # w3, b3
                  resident(Hp, Ap), resident(1, Ap)],         # w4, b4 (mask baked)
        out_specs=pl.BlockSpec((TB, Ap), lambda i: (i, 0)),   # lane-dense (Ap = k*128)
        compiler_params=pltpu.CompilerParams(
            dimension_semantics=("parallel",),
            vmem_limit_bytes=vmem_limit),
    )(obs_p, inv_temp,
      p["w1"], p["b1"], p["ln_g"], p["ln_b"],
      p["w2"], p["b2"],
      p["w3"], p["b3"],
      p["w4"], p["b4"])

    return probs_p[:B, :n_actions]


def init_params(key, repr_dim, feature_dim, hidden_dim, n_actions):
    """Deterministic synthetic init (scaled normal)."""
    ks = jax.random.split(key, 4)

    def lin(kw, fan_in, fan_out):
        return jax.random.normal(kw, (fan_in, fan_out), jnp.float32) / jnp.sqrt(fan_in)

    return {
        "w1": lin(ks[0], repr_dim, feature_dim),
        "b1": jnp.zeros((1, feature_dim), jnp.float32),
        "ln_g": jnp.ones((1, feature_dim), jnp.float32),
        "ln_b": jnp.zeros((1, feature_dim), jnp.float32),
        "w2": lin(ks[1], feature_dim, hidden_dim),
        "b2": jnp.zeros((1, hidden_dim), jnp.float32),
        "w3": lin(ks[2], hidden_dim, hidden_dim),
        "b3": jnp.zeros((1, hidden_dim), jnp.float32),
        "w4": lin(ks[3], hidden_dim, n_actions),
        "b4": jnp.zeros((1, n_actions), jnp.float32),
    }


def _reference(obs, p, std):
    h = obs @ p["w1"] + p["b1"]
    mu = h.mean(-1, keepdims=True)
    var = ((h - mu) ** 2).mean(-1, keepdims=True)
    h = (h - mu) / jnp.sqrt(var + 1e-5) * p["ln_g"] + p["ln_b"]
    h = jnp.tanh(h)
    h = jnp.maximum(h @ p["w2"] + p["b2"], 0.0)
    h = jnp.maximum(h @ p["w3"] + p["b3"], 0.0)
    logits = h @ p["w4"] + p["b4"]
    return jax.nn.softmax(logits / (std * 10.0), axis=-1)


if __name__ == "__main__":
    key = jax.random.PRNGKey(0)
    k_obs, k_par = jax.random.split(key)

    # Small shapes consistent with the module's forward.
    B, repr_dim, feature_dim, hidden_dim, n_actions = 8, 128, 64, 32, 6
    std = 0.5

    obs = jax.random.normal(k_obs, (B, repr_dim), jnp.float32)
    params = init_params(k_par, repr_dim, feature_dim, hidden_dim, n_actions)

    padded_params, meta = prepare_params(params)

    probs = discrete_actor_forward(
        obs, padded_params, std,
        feature_dim=meta["feature_dim"], n_actions=meta["n_actions"])
    probs = jax.block_until_ready(probs)

    # Reference uses the same bf16-rounded weight values the kernel sees
    # (activations in the kernel are additionally bf16 before each matmul).
    ref_params = {k: (v.astype(jnp.bfloat16).astype(jnp.float32)
                      if k.startswith("w") else v)
                  for k, v in params.items()}
    ref = _reference(obs, ref_params, jnp.float32(std))

    assert probs.shape == (B, n_actions)
    assert bool(jnp.all(jnp.isfinite(probs)))
    # Exact softmax normalization inside the kernel -> sums are f32-exact.
    assert jnp.allclose(jnp.sum(probs, axis=-1), 1.0, atol=1e-4)
    # Tolerance covers the bf16 activation/weight rounding in the kernel.
    assert jnp.allclose(probs, ref, atol=2e-3, rtol=2e-2)

    print("KERNEL_OK")
</pallas_src>

<mosaic_0001>
module attributes {stable_mosaic.version = 11 : i64} {
  func.func @_actor_kernel(%arg0: i32, %arg1: memref<8x128xf32, #tpu.memory_space<vmem>>, %arg2: memref<1x1xf32, #tpu.memory_space<vmem>>, %arg3: memref<128x128xbf16, #tpu.memory_space<vmem>>, %arg4: memref<1x128xf32, #tpu.memory_space<vmem>>, %arg5: memref<1x128xf32, #tpu.memory_space<vmem>>, %arg6: memref<1x128xf32, #tpu.memory_space<vmem>>, %arg7: memref<128x128xbf16, #tpu.memory_space<vmem>>, %arg8: memref<1x128xf32, #tpu.memory_space<vmem>>, %arg9: memref<128x128xbf16, #tpu.memory_space<vmem>>, %arg10: memref<1x128xf32, #tpu.memory_space<vmem>>, %arg11: memref<128x128xbf16, #tpu.memory_space<vmem>>, %arg12: memref<1x128xf32, #tpu.memory_space<vmem>>, %arg13: memref<8x128xf32, #tpu.memory_space<vmem>>) attributes {dimension_semantics = [#tpu.dimension_semantics<parallel>], iteration_bounds = array<i64: 1>, scalar_prefetch = 0 : i64, scratch_operands = 0 : i64, tpu.core_type = #tpu.core_type<tc>, window_params = [{transform_indices = @transform_0, window_bounds = array<i64: 8, 128>}, {pipeline_mode = #tpu.pipeline_mode<synchronous>, transform_indices = @transform_1, window_bounds = array<i64: 1, 1>}, {pipeline_mode = #tpu.pipeline_mode<synchronous>, transform_indices = @transform_2, window_bounds = array<i64: 128, 128>}, {pipeline_mode = #tpu.pipeline_mode<synchronous>, transform_indices = @transform_3, window_bounds = array<i64: 1, 128>}, {pipeline_mode = #tpu.pipeline_mode<synchronous>, transform_indices = @transform_4, window_bounds = array<i64: 1, 128>}, {pipeline_mode = #tpu.pipeline_mode<synchronous>, transform_indices = @transform_5, window_bounds = array<i64: 1, 128>}, {pipeline_mode = #tpu.pipeline_mode<synchronous>, transform_indices = @transform_6, window_bounds = array<i64: 128, 128>}, {pipeline_mode = #tpu.pipeline_mode<synchronous>, transform_indices = @transform_7, window_bounds = array<i64: 1, 128>}, {pipeline_mode = #tpu.pipeline_mode<synchronous>, transform_indices = @transform_8, window_bounds = array<i64: 128, 128>}, {pipeline_mode = #tpu.pipeline_mode<synchronous>, transform_indices = @transform_9, window_bounds = array<i64: 1, 128>}, {pipeline_mode = #tpu.pipeline_mode<synchronous>, transform_indices = @transform_10, window_bounds = array<i64: 128, 128>}, {pipeline_mode = #tpu.pipeline_mode<synchronous>, transform_indices = @transform_11, window_bounds = array<i64: 1, 128>}, {transform_indices = @transform_12, window_bounds = array<i64: 8, 128>}]} {
    %c0 = arith.constant 0 : index
    %c0_0 = arith.constant 0 : index
    %0 = vector.load %arg1[%c0, %c0_0] : memref<8x128xf32, #tpu.memory_space<vmem>>, vector<8x128xf32>
    %1 = arith.truncf %0 : vector<8x128xf32> to vector<8x128xbf16>
    %c0_1 = arith.constant 0 : index
    %c0_2 = arith.constant 0 : index
    %2 = vector.load %arg3[%c0_1, %c0_2] : memref<128x128xbf16, #tpu.memory_space<vmem>>, vector<128x128xbf16>
    %cst = arith.constant dense<0.000000e+00> : vector<8x128xf32>
    %3 = tpu.matmul %1, %2, %cst {dimension_numbers = #tpu.dot_dimension_numbers<[1], [0], [0], [1], [0, 0, 1, 1], [], []>} : vector<8x128xbf16>, vector<128x128xbf16>, vector<8x128xf32> -> vector<8x128xf32>
    %c0_3 = arith.constant 0 : index
    %c0_4 = arith.constant 0 : index
    %4 = vector.load %arg4[%c0_3, %c0_4] : memref<1x128xf32, #tpu.memory_space<vmem>>, vector<1x128xf32>
    %5 = vector.broadcast %4 : vector<1x128xf32> to vector<8x128xf32>
    %6 = arith.addf %3, %5 : vector<8x128xf32>
    %cst_5 = arith.constant dense<0.000000e+00> : vector<8xf32>
    %7 = vector.multi_reduction <add>, %6, %cst_5 [1] : vector<8x128xf32> to vector<8xf32>
    %8 = vector.shape_cast %7 : vector<8xf32> to vector<8x1xf32>
    %cst_6 = arith.constant 1.562500e-02 : f32
    %9 = vector.broadcast %cst_6 : f32 to vector<8x1xf32>
    %10 = arith.mulf %8, %9 : vector<8x1xf32>
    %11 = vector.broadcast %10 : vector<8x1xf32> to vector<8x128xf32>
    %12 = arith.subf %6, %11 : vector<8x128xf32>
    %13 = arith.mulf %12, %12 : vector<8x128xf32>
    %cst_7 = arith.constant dense<0.000000e+00> : vector<8xf32>
    %14 = vector.multi_reduction <add>, %13, %cst_7 [1] : vector<8x128xf32> to vector<8xf32>
    %15 = vector.shape_cast %14 : vector<8xf32> to vector<8x1xf32>
    %16 = arith.mulf %10, %10 : vector<8x1xf32>
    %cst_8 = arith.constant 6.400000e+01 : f32
    %17 = vector.broadcast %cst_8 : f32 to vector<8x1xf32>
    %18 = arith.mulf %17, %16 : vector<8x1xf32>
    %19 = arith.subf %15, %18 : vector<8x1xf32>
    %cst_9 = arith.constant 1.562500e-02 : f32
    %20 = vector.broadcast %cst_9 : f32 to vector<8x1xf32>
    %21 = arith.mulf %19, %20 : vector<8x1xf32>
    %cst_10 = arith.constant 0.000000e+00 : f32
    %22 = vector.broadcast %cst_10 : f32 to vector<8x1xf32>
    %23 = arith.maximumf %21, %22 : vector<8x1xf32>
    %cst_11 = arith.constant 9.99999974E-6 : f32
    %24 = vector.broadcast %cst_11 : f32 to vector<8x1xf32>
    %25 = arith.addf %23, %24 : vector<8x1xf32>
    %26 = math.rsqrt %25 : vector<8x1xf32>
    %27 = vector.broadcast %26 : vector<8x1xf32> to vector<8x128xf32>
    %28 = arith.mulf %12, %27 : vector<8x128xf32>
    %c0_12 = arith.constant 0 : index
    %c0_13 = arith.constant 0 : index
    %29 = vector.load %arg5[%c0_12, %c0_13] : memref<1x128xf32, #tpu.memory_space<vmem>>, vector<1x128xf32>
    %30 = vector.broadcast %29 : vector<1x128xf32> to vector<8x128xf32>
    %31 = arith.mulf %28, %30 : vector<8x128xf32>
    %c0_14 = arith.constant 0 : index
    %c0_15 = arith.constant 0 : index
    %32 = vector.load %arg6[%c0_14, %c0_15] : memref<1x128xf32, #tpu.memory_space<vmem>>, vector<1x128xf32>
    %33 = vector.broadcast %32 : vector<1x128xf32> to vector<8x128xf32>
    %34 = arith.addf %31, %33 : vector<8x128xf32>
    %35 = math.tanh %34 : vector<8x128xf32>
    %36 = arith.truncf %35 : vector<8x128xf32> to vector<8x128xbf16>
    %c0_16 = arith.constant 0 : index
    %c0_17 = arith.constant 0 : index
    %37 = vector.load %arg7[%c0_16, %c0_17] : memref<128x128xbf16, #tpu.memory_space<vmem>>, vector<128x128xbf16>
    %cst_18 = arith.constant dense<0.000000e+00> : vector<8x128xf32>
    %38 = tpu.matmul %36, %37, %cst_18 {dimension_numbers = #tpu.dot_dimension_numbers<[1], [0], [0], [1], [0, 0, 1, 1], [], []>} : vector<8x128xbf16>, vector<128x128xbf16>, vector<8x128xf32> -> vector<8x128xf32>
    %c0_19 = arith.constant 0 : index
    %c0_20 = arith.constant 0 : index
    %39 = vector.load %arg8[%c0_19, %c0_20] : memref<1x128xf32, #tpu.memory_space<vmem>>, vector<1x128xf32>
    %40 = vector.broadcast %39 : vector<1x128xf32> to vector<8x128xf32>
    %41 = arith.addf %38, %40 : vector<8x128xf32>
    %cst_21 = arith.constant 0.000000e+00 : f32
    %42 = vector.broadcast %cst_21 : f32 to vector<8x128xf32>
    %43 = arith.maximumf %41, %42 : vector<8x128xf32>
    %44 = arith.truncf %43 : vector<8x128xf32> to vector<8x128xbf16>
    %c0_22 = arith.constant 0 : index
    %c0_23 = arith.constant 0 : index
    %45 = vector.load %arg9[%c0_22, %c0_23] : memref<128x128xbf16, #tpu.memory_space<vmem>>, vector<128x128xbf16>
    %cst_24 = arith.constant dense<0.000000e+00> : vector<8x128xf32>
    %46 = tpu.matmul %44, %45, %cst_24 {dimension_numbers = #tpu.dot_dimension_numbers<[1], [0], [0], [1], [0, 0, 1, 1], [], []>} : vector<8x128xbf16>, vector<128x128xbf16>, vector<8x128xf32> -> vector<8x128xf32>
    %c0_25 = arith.constant 0 : index
    %c0_26 = arith.constant 0 : index
    %47 = vector.load %arg10[%c0_25, %c0_26] : memref<1x128xf32, #tpu.memory_space<vmem>>, vector<1x128xf32>
    %48 = vector.broadcast %47 : vector<1x128xf32> to vector<8x128xf32>
    %49 = arith.addf %46, %48 : vector<8x128xf32>
    %cst_27 = arith.constant 0.000000e+00 : f32
    %50 = vector.broadcast %cst_27 : f32 to vector<8x128xf32>
    %51 = arith.maximumf %49, %50 : vector<8x128xf32>
    %52 = arith.truncf %51 : vector<8x128xf32> to vector<8x128xbf16>
    %c0_28 = arith.constant 0 : index
    %c0_29 = arith.constant 0 : index
    %53 = vector.load %arg11[%c0_28, %c0_29] : memref<128x128xbf16, #tpu.memory_space<vmem>>, vector<128x128xbf16>
    %cst_30 = arith.constant dense<0.000000e+00> : vector<8x128xf32>
    %54 = tpu.matmul %52, %53, %cst_30 {dimension_numbers = #tpu.dot_dimension_numbers<[1], [0], [0], [1], [0, 0, 1, 1], [], []>} : vector<8x128xbf16>, vector<128x128xbf16>, vector<8x128xf32> -> vector<8x128xf32>
    %c0_31 = arith.constant 0 : index
    %c0_32 = arith.constant 0 : index
    %55 = vector.load %arg12[%c0_31, %c0_32] : memref<1x128xf32, #tpu.memory_space<vmem>>, vector<1x128xf32>
    %56 = vector.broadcast %55 : vector<1x128xf32> to vector<8x128xf32>
    %57 = arith.addf %54, %56 : vector<8x128xf32>
    %c0_33 = arith.constant 0 : index
    %c0_34 = arith.constant 0 : index
    %58 = vector.load %arg2[%c0_33, %c0_34] : memref<1x1xf32, #tpu.memory_space<vmem>>, vector<1x1xf32>
    %59 = vector.broadcast %58 : vector<1x1xf32> to vector<8x128xf32>
    %60 = arith.mulf %57, %59 : vector<8x128xf32>
    %cst_35 = arith.constant dense<0xFF800000> : vector<8xf32>
    %61 = vector.multi_reduction <maximumf>, %60, %cst_35 [1] : vector<8x128xf32> to vector<8xf32>
    %62 = vector.shape_cast %61 : vector<8xf32> to vector<8x1xf32>
    %63 = vector.broadcast %62 : vector<8x1xf32> to vector<8x128xf32>
    %64 = arith.subf %60, %63 : vector<8x128xf32>
    %65 = math.exp %64 : vector<8x128xf32>
    %cst_36 = arith.constant dense<0.000000e+00> : vector<8xf32>
    %66 = vector.multi_reduction <add>, %65, %cst_36 [1] : vector<8x128xf32> to vector<8xf32>
    %67 = vector.shape_cast %66 : vector<8xf32> to vector<8x1xf32>
    %cst_37 = arith.constant 1.000000e+00 : f32
    %68 = vector.broadcast %cst_37 : f32 to vector<8x1xf32>
    %69 = arith.divf %68, %67 : vector<8x1xf32>
    %70 = vector.broadcast %69 : vector<8x1xf32> to vector<8x128xf32>
    %71 = arith.mulf %65, %70 : vector<8x128xf32>
    %c0_38 = arith.constant 0 : index
    %c0_39 = arith.constant 0 : index
    %72 = vector.load %arg13[%c0_38, %c0_39] : memref<8x128xf32, #tpu.memory_space<vmem>>, vector<8x128xf32>
    tpu.vector_store %arg13[%c0_38, %c0_39], %71 {strides = array<i32>} : memref<8x128xf32, #tpu.memory_space<vmem>>, vector<8x128xf32>,
    return
  }
  func.func @transform_0(%arg0: i32) -> (i32, i32) {
    %c0_i32 = arith.constant 0 : i32
    %c0_i32_0 = arith.constant 0 : i32
    return %arg0, %c0_i32 : i32, i32
  }
  func.func @transform_1(%arg0: i32) -> (i32, i32) {
    %c0_i32 = arith.constant 0 : i32
    %c0_i32_0 = arith.constant 0 : i32
    %c0_i32_1 = arith.constant 0 : i32
    return %c0_i32, %c0_i32_0 : i32, i32
  }
  func.func @transform_2(%arg0: i32) -> (i32, i32) {
    %c0_i32 = arith.constant 0 : i32
    %c0_i32_0 = arith.constant 0 : i32
    %c0_i32_1 = arith.constant 0 : i32
    return %c0_i32, %c0_i32_0 : i32, i32
  }
  func.func @transform_3(%arg0: i32) -> (i32, i32) {
    %c0_i32 = arith.constant 0 : i32
    %c0_i32_0 = arith.constant 0 : i32
    %c0_i32_1 = arith.constant 0 : i32
    return %c0_i32, %c0_i32_0 : i32, i32
  }
  func.func @transform_4(%arg0: i32) -> (i32, i32) {
    %c0_i32 = arith.constant 0 : i32
    %c0_i32_0 = arith.constant 0 : i32
    %c0_i32_1 = arith.constant 0 : i32
    return %c0_i32, %c0_i32_0 : i32, i32
  }
  func.func @transform_5(%arg0: i32) -> (i32, i32) {
    %c0_i32 = arith.constant 0 : i32
    %c0_i32_0 = arith.constant 0 : i32
    %c0_i32_1 = arith.constant 0 : i32
    return %c0_i32, %c0_i32_0 : i32, i32
  }
  func.func @transform_6(%arg0: i32) -> (i32, i32) {
    %c0_i32 = arith.constant 0 : i32
    %c0_i32_0 = arith.constant 0 : i32
    %c0_i32_1 = arith.constant 0 : i32
    return %c0_i32, %c0_i32_0 : i32, i32
  }
  func.func @transform_7(%arg0: i32) -> (i32, i32) {
    %c0_i32 = arith.constant 0 : i32
    %c0_i32_0 = arith.constant 0 : i32
    %c0_i32_1 = arith.constant 0 : i32
    return %c0_i32, %c0_i32_0 : i32, i32
  }
  func.func @transform_8(%arg0: i32) -> (i32, i32) {
    %c0_i32 = arith.constant 0 : i32
    %c0_i32_0 = arith.constant 0 : i32
    %c0_i32_1 = arith.constant 0 : i32
    return %c0_i32, %c0_i32_0 : i32, i32
  }
  func.func @transform_9(%arg0: i32) -> (i32, i32) {
    %c0_i32 = arith.constant 0 : i32
    %c0_i32_0 = arith.constant 0 : i32
    %c0_i32_1 = arith.constant 0 : i32
    return %c0_i32, %c0_i32_0 : i32, i32
  }
  func.func @transform_10(%arg0: i32) -> (i32, i32) {
    %c0_i32 = arith.constant 0 : i32
    %c0_i32_0 = arith.constant 0 : i32
    %c0_i32_1 = arith.constant 0 : i32
    return %c0_i32, %c0_i32_0 : i32, i32
  }
  func.func @transform_11(%arg0: i32) -> (i32, i32) {
    %c0_i32 = arith.constant 0 : i32
    %c0_i32_0 = arith.constant 0 : i32
    %c0_i32_1 = arith.constant 0 : i32
    return %c0_i32, %c0_i32_0 : i32, i32
  }
  func.func @transform_12(%arg0: i32) -> (i32, i32) {
    %c0_i32 = arith.constant 0 : i32
    %c0_i32_0 = arith.constant 0 : i32
    return %arg0, %c0_i32 : i32, i32
  }
}

</mosaic_0001>

<bundles_post_ra>
// kernel: discrete_actor_forward.1
= control target key start
LH: loop header
LB: loop body
LE: loop exit
PB: predicated region body
PF: predicated region fallthrough
CT: control target
= control target key end

     0   :  { %s1043_s0 = inlined_call_operand.vmem [shape: f32[8,128], index: 0, kind: input, shape index: {}]   ;;  %s1044_s1 = inlined_call_operand.<no memory space> [shape: f32[1,1], index: 1, kind: input, shape index: {}]   ;;  %s1045_s2 = inlined_call_operand.hbm [shape: bf16[128,128], index: 2, kind: input, shape index: {}]   ;;  %s1046_s3 = inlined_call_operand.vmem [shape: f32[1,128], index: 3, kind: input, shape index: {}]   ;;  %s1047_s4 = inlined_call_operand.vmem [shape: f32[1,128], index: 4, kind: input, shape index: {}]   ;;  %s1048_s5 = inlined_call_operand.vmem [shape: f32[1,128], index: 5, kind: input, shape index: {}]   ;;  %s1049_s6 = inlined_call_operand.hbm [shape: bf16[128,128], index: 6, kind: input, shape index: {}]   ;;  %s1050_s7 = inlined_call_operand.hbm [shape: f32[1,128], index: 7, kind: input, shape index: {}]   ;;  %s1051_s8 = inlined_call_operand.hbm [shape: bf16[128,128], index: 8, kind: input, shape index: {}]   ;;  %s1052_s9 = inlined_call_operand.hbm [shape: f32[1,128], index: 9, kind: input, shape index: {}]   ;;  %s1053_s10 = inlined_call_operand.hbm [shape: bf16[128,128], index: 10, kind: input, shape index: {}]   ;;  %s1054_s11 = inlined_call_operand.vmem [shape: f32[1,128], index: 11, kind: input, shape index: {}]   ;;  %s1055_s12 = inlined_call_operand.hbm [shape: f32[8,128], index: 12, kind: output, shape index: {}]  }
   0x1   :  { %v17_v0 = vstv %s1044_s1 }
   0x2   :  { %18 = vst [vmem:[#allocation2] sm:$0x1] %v17_v0 }
   0x3   :  { %19 = vsyncpa [#allocation4], 0 }
   0x4   :  { %20 = vsyncpa [#allocation7], 0 }
   0x5   :  { %21 = vsyncpa [#allocation10], 0 }
   0x6   :  { %22 = vsyncpa [#allocation13], 0 }
   0x7   :  { %23 = vsyncpa [#allocation5], 0  ;;  %s51_s25 = sshll.u32 %s1049_s6, 4  ;;  %s917_s26 = smov [#allocation6]   ;;  %s52_s25 = int_to_ptr.hbm [resolvable:$true] %s51_s25 }
   0x8   :  { %s53_s27 = sshll.u32 %s917_s26, 4  ;;  %s75_s30 = sshll.u32 %s1051_s8, 4  ;;  %s54_s27 = int_to_ptr.vmem [resolvable:$true] %s53_s27  ;;  %s76_s30 = int_to_ptr.hbm [resolvable:$true] %s75_s30 }
   0x9   :  { %s918_s13 = smov 64   ;;  %s919_s1 = smov 4  }
   0xa   :  { %59 = dma.hbm_to_vmem [thread:$0]  %s52_s25, 1024, %s54_s27, [#allocation7], %s918_s13, %s918_s13, %s919_s1  }
   0xb   :  { %s920_s14 = smov [#allocation9]   ;;  %s32_s6 = sshll.u32 %s1045_s2, 4  ;;  %s33_s6 = int_to_ptr.hbm [resolvable:$true] %s32_s6 }
   0xc   :  { %s77_s15 = sshll.u32 %s920_s14, 4  ;;  %s65_s19 = sshll.u32 %s1050_s7, 4  ;;  %s78_s15 = int_to_ptr.vmem [resolvable:$true] %s77_s15  ;;  %s66_s19 = int_to_ptr.hbm [resolvable:$true] %s65_s19 }
   0xd   :  { %83 = dma.hbm_to_vmem [thread:$0]  %s76_s30, 1024, %s78_s15, [#allocation10], %s918_s13, %s918_s13, %s919_s1  }
   0xe   :  { %s921_s20 = smov [#allocation3]   ;;  %s922_s22 = smov [#allocation8]  }
   0xf   :  { %s34_s21 = sshll.u32 %s921_s20, 4  ;;  %s67_s2 = sshll.u32 %s922_s22, 4  ;;  %s35_s21 = int_to_ptr.vmem [resolvable:$true] %s34_s21  ;;  %s68_s2 = int_to_ptr.vmem [resolvable:$true] %s67_s2 }
  0x10   :  { %40 = dma.hbm_to_vmem [thread:$0]  %s33_s6, 1024, %s35_s21, [#allocation4], %s918_s13, %s918_s13, %s919_s1  }
  0x11   :  { %s89_s25 = sshll.u32 %s1052_s9, 4  ;;  %s99_s7 = sshll.u32 %s1053_s10, 4  ;;  %s90_s25 = int_to_ptr.hbm [resolvable:$true] %s89_s25  ;;  %s100_s7 = int_to_ptr.hbm [resolvable:$true] %s99_s7 }
  0x12   :  { %70 = dma.hbm_to_vmem [thread:$0]  %s66_s19, 16, %s68_s2, [#allocation7]  }
  0x13   :  { %s923_s28 = smov [#allocation11]   ;;  %s924_s30 = smov [#allocation12]  }
  0x14   :  { %s91_s29 = sshll.u32 %s923_s28, 4  ;;  %s101_s14 = sshll.u32 %s924_s30, 4  ;;  %s92_s29 = int_to_ptr.vmem [resolvable:$true] %s91_s29  ;;  %s102_s14 = int_to_ptr.vmem [resolvable:$true] %s101_s14 }
  0x15   :  { %94 = dma.hbm_to_vmem [thread:$0]  %s90_s25, 16, %s92_s29, [#allocation10]  }
  0x16   :  { %107 = dma.hbm_to_vmem [thread:$0]  %s100_s7, 1024, %s102_s14, [#allocation13], %s918_s13, %s918_s13, %s919_s1  }
  0x17   :  { %907 = dma.done.wait [#allocation4], 1024  }
  0x18   :  { %908 = vsyncadd [#allocation4], 4294966272 }
  0x19   :  { %909 = dma.done.wait [#allocation7], 1040  }
  0x1a   :  { %910 = vsyncadd [#allocation7], 4294966256 }
  0x1b   :  { %911 = dma.done.wait [#allocation10], 1040  }
  0x1c   :  { %912 = vsyncadd [#allocation10], 4294966256 }
  0x1d   :  { %913 = dma.done.wait [#allocation13], 1024  }
  0x1e   :  { %914 = vsyncadd [#allocation13], 4294966272  ;;  %v687_v1 = vld [vmem:[#allocation3 + $0x38] sm:$0xff]  ;;  %v686_v2 = vld [vmem:[#allocation3 + $0x30] sm:$0xff]  ;;  %s539_s18 = sshll.u32 %s1055_s12, 4  ;;  %s540_s18 = int_to_ptr.hbm [resolvable:$true] %s539_s18 }
  0x1f   :  { %204 = vmatpush.bf16.msra.mxu0 %v687_v1  ;;  %v685_v3 = vld [vmem:[#allocation3 + $0x28] sm:$0xff]  ;;  %v684_v4 = vld [vmem:[#allocation3 + $0x20] sm:$0xff]  ;;  %v683_v5 = vld [vmem:[#allocation3 + $0x18] sm:$0xff] }
  0x20   :  { %v682_v6 = vld [vmem:[#allocation3 + $0x10] sm:$0xff]  ;;  %v681_v7 = vld [vmem:[#allocation3 + $0x8] sm:$0xff]  ;;  %v680_v8 = vld [vmem:[#allocation3] sm:$0xff] }
  0x21   :  { %v134_v9 = vld [vmem:[%s1043_s0] sm:$0xff]  ;;  %v694_v20 = vld [vmem:[#allocation6 + $0x30] sm:$0xff]  ;;  %v693_v21 = vld [vmem:[#allocation6 + $0x28] sm:$0xff] }
  0x22   :  { %v135_v10 = vpack.c.bf16 %v134_v9, %v134_v9  ;;  %v724_v11 = vld [vmem:[%s1046_s3] ss:$0 sm:$0xff]  ;;  %v692_v22 = vld [vmem:[#allocation6 + $0x20] sm:$0xff]  ;;  %v690_v25 = vld [vmem:[#allocation6 + $0x10] sm:$0xff] }
  0x23   :  { %205 = vmatpush.bf16.msra.mxu0 %v686_v2  ;;  %v695_v19 = vld [vmem:[#allocation6 + $0x38] sm:$0xff]  ;;  %v689_v27 = vld [vmem:[#allocation6 + $0x8] sm:$0xff]  ;;  %v688_v31 = vld [vmem:[#allocation6] sm:$0xff] }
  0x24   :  { %321 = vmatpush.bf16.msra.mxu1 %v695_v19  ;;  %v691_v23 = vld [vmem:[#allocation6 + $0x18] sm:$0xff]  ;;  %v701_v38 = vld [vmem:[#allocation9 + $0x28] sm:$0xff]  ;;  %v700_v41 = vld [vmem:[#allocation9 + $0x20] sm:$0xff] }
  0x25   :  { %v703_v34 = vld [vmem:[#allocation9 + $0x38] sm:$0xff]  ;;  %v702_v35 = vld [vmem:[#allocation9 + $0x30] sm:$0xff]  ;;  %v697_v54 = vld [vmem:[#allocation9 + $0x8] sm:$0xff] }
  0x26   :  { %404 = vmatpush.bf16.msra.mxu2 %v703_v34  ;;  %v699_v44 = vld [vmem:[#allocation9 + $0x18] sm:$0xff]  ;;  %v698_v49 = vld [vmem:[#allocation9 + $0x10] sm:$0xff]  ;;  %v696_v55 = vld [vmem:[#allocation9] sm:$0xff] }
  0x27   :  { %206 = vmatpush.bf16.msra.mxu0 %v685_v3  ;;  %v725_v45 = vld [vmem:[%s1047_s4] ss:$0 sm:$0xff]  ;;  %v710_v57 = vld [vmem:[#allocation12 + $0x30] sm:$0xff]  ;;  %v709_v58 = vld [vmem:[#allocation12 + $0x28] sm:$0xff] }
  0x28   :  { %322 = vmatpush.bf16.msra.mxu1 %v694_v20  ;;  %v726_v48 = vld [vmem:[%s1048_s5] ss:$0 sm:$0xff]  ;;  %v708_v59 = vld [vmem:[#allocation12 + $0x20] sm:$0xff]  ;;  %v706_v61 = vld [vmem:[#allocation12 + $0x10] sm:$0xff] }
  0x29   :  { %v711_v56 = vld [vmem:[#allocation12 + $0x38] sm:$0xff] }
  0x2a   :  { %405 = vmatpush.bf16.msra.mxu2 %v702_v35  ;;  %487 = vmatpush.bf16.msra.mxu3 %v711_v56  ;;  %v707_v60 = vld [vmem:[#allocation12 + $0x18] sm:$0xff] }
  0x2b   :  { %207 = vmatpush.bf16.msra.mxu0 %v684_v4  ;;  %v727_v62 = vld [vmem:[#allocation8] ss:$0 sm:$0xff]  ;;  %v705_v4 = vld [vmem:[#allocation12 + $0x8] sm:$0xff] }
  0x2c   :  { %323 = vmatpush.bf16.msra.mxu1 %v693_v21 }
  0x2e   :  { %406 = vmatpush.bf16.msra.mxu2 %v701_v38  ;;  %488 = vmatpush.bf16.msra.mxu3 %v710_v57 }
  0x2f   :  { %208 = vmatpush.bf16.msra.mxu0 %v683_v5  ;;  %v704_v5 = vld [vmem:[#allocation12] sm:$0xff] }
  0x30   :  { %324 = vmatpush.bf16.msra.mxu1 %v692_v22 }
  0x32   :  { %407 = vmatpush.bf16.msra.mxu2 %v700_v41  ;;  %489 = vmatpush.bf16.msra.mxu3 %v709_v58 }
  0x33   :  { %209 = vmatpush.bf16.msra.mxu0 %v682_v6  ;;  %v729_v6 = vld [vmem:[#allocation2] ss:$0 sm:$0xff] }
  0x34   :  { %325 = vmatpush.bf16.msra.mxu1 %v691_v23 }
  0x36   :  { %408 = vmatpush.bf16.msra.mxu2 %v699_v44  ;;  %490 = vmatpush.bf16.msra.mxu3 %v708_v59 }
  0x37   :  { %210 = vmatpush.bf16.msra.mxu0 %v681_v7  ;;  %v925_v7 = vmov 0  }
  0x38   :  { %326 = vmatpush.bf16.msra.mxu1 %v690_v25  ;;  %722 = vset.pattern.permute.xlu1 %v925_v7 }
  0x39   :  { %723 = vset.pattern.permute.xlu0 %v925_v7  ;;  %504 = vperm.xlu1 %722, %v729_v6  }
  0x3a   :  { %409 = vmatpush.bf16.msra.mxu2 %v698_v49  ;;  %491 = vmatpush.bf16.msra.mxu3 %v707_v60 }
  0x3b   :  { %211 = vmatpush.bf16.msra.mxu0 %v680_v8  ;;  %v728_v8 = vld [vmem:[#allocation11] ss:$0 sm:$0xff] }
  0x3c   :  { %327 = vmatpush.bf16.msra.mxu1 %v689_v27 }
  0x3e   :  { %212 = vmatmul.bf16.vlgmr.msra.gmra.mxu0 %v135_v10  ;;  %410 = vmatpush.bf16.msra.mxu2 %v697_v54 }
  0x3f   :  { %492 = vmatpush.bf16.msra.mxu3 %v706_v61 }
  0x40   :  { %328 = vmatpush.bf16.msra.mxu1 %v688_v31 }
  0x42   :  { %411 = vmatpush.bf16.msra.mxu2 %v696_v55 }
  0x43   :  { %493 = vmatpush.bf16.msra.mxu3 %v705_v4 }
  0x47   :  { %494 = vmatpush.bf16.msra.mxu3 %v704_v5 }
  0xbb   :  { %v213_v12 = vpop.f32.mrf.mxu0 }
  0xbc   :  { %v214_v13 = vadd.f32 %v724_v11, %v213_v12 }
  0xbe   :  { %217 = vadd.xlane.f32.xlu0 %v214_v13 }
  0xc3   :  { %v215_v14 = vpop.f32.mrf.mxu0 }
  0xc4   :  { %v730_v14 = vld [vmem:[%s1054_s11] ss:$0 sm:$0xff]  ;;  %s926_s11 = smov [#allocation14]  }
  0xc5   :  { %s537_s17 = sshll.u32 %s926_s11, 4  ;;  %s538_s17 = int_to_ptr.vmem [resolvable:$true] %s537_s17 }
 0x131   :  { %v218_v15 = vpop.xlane.xlu0 %217 }
 0x132   :  { %v219_v16 = vmul.f32 0.015625, %v218_v15 }
 0x134   :  { %v220_v17 = vsub.f32 %v214_v13, %v219_v16  ;;  %v224_v24 = vmul.f32 %v219_v16, %v219_v16  ;;  %v505_v16 = vpop.permute.xlu1 %504 }
 0x136   :  { %v221_v18 = vmul.f32 %v220_v17, %v220_v17  ;;  %v225_v26 = vmul.f32 64.0, %v224_v24 }
 0x138   :  { %222 = vadd.xlane.f32.xlu0 %v221_v18 }
 0x1ab   :  { %v223_v28 = vpop.xlane.xlu0 %222 }
 0x1ac   :  { %v226_v29 = vsub.f32 %v223_v28, %v225_v26 }
 0x1ae   :  { %v227_v30 = vmul.f32 0.015625, %v226_v29 }
 0x1b0   :  { %v228_v32 = vmax.f32 %v227_v30, 0.0 }
 0x1b2   :  { %v229_v33 = vadd.f32 1e-05, %v228_v32 }
 0x1b4   :  { %731 = vrsqrt.f32 %v229_v33  ;;  %vm236_vm1 = vweird.f32 %v229_v33 }
 0x1ba   :  { %v732_v36 = vpop.eup %731 }
 0x1bb   :  { %v231_v37 = vmul.f32 %v732_v36, %v229_v33  ;;  %vm237_vm0 = vweird.f32 %v732_v36 }
 0x1bc   :  { %vm238_vm2 = vmor %vm236_vm1, %vm237_vm0 }
 0x1bd   :  { %v232_v39 = vmul.f32 %v732_v36, %v231_v37 }
 0x1bf   :  { %v233_v40 = vmul.f32 0.5, %v232_v39 }
 0x1c1   :  { %v234_v42 = vsub.f32 1.5, %v233_v40 }
 0x1c3   :  { %v235_v43 = vmul.f32 %v732_v36, %v234_v42 }
 0x1c5   :  { %v239_v46 = vsel %vm238_vm2, %v732_v36, %v235_v43 }
 0x1c6   :  { %v240_v47 = vmul.f32 %v239_v46, %v220_v17 }
 0x1c8   :  { %v245_v50 = vmul.f32 %v725_v45, %v240_v47 }
 0x1ca   :  { %v250_v51 = vadd.f32 %v726_v48, %v245_v50 }
 0x1cc   :  { %733 = vtanh.f32 %v250_v51 }
 0x1d2   :  { %v734_v52 = vpop.eup %733 }
 0x1d3   :  { %v252_v53 = vpack.c.bf16 %v734_v52, %v734_v52 }
 0x1d5   :  { %329 = vmatmul.bf16.vlgmr.msra.gmra.mxu1 %v252_v53 }
 0x252   :  { %v330_v63 = vpop.f32.mrf.mxu1 }
 0x253   :  { %v331_v0 = vadd.f32 %v727_v62, %v330_v63 }
 0x255   :  { %v334_v1 = vmax.f32 %v331_v0, 0.0 }
 0x257   :  { %v335_v2 = vpack.c.bf16 %v334_v1, %v334_v1 }
 0x259   :  { %412 = vmatmul.bf16.vlgmr.msra.gmra.mxu2 %v335_v2 }
 0x25a   :  { %v332_v3 = vpop.f32.mrf.mxu1 }
 0x2dc   :  { %v413_v9 = vpop.f32.mrf.mxu2 }
 0x2dd   :  { %v414_v10 = vadd.f32 %v728_v8, %v413_v9 }
 0x2df   :  { %v417_v11 = vmax.f32 %v414_v10, 0.0 }
 0x2e1   :  { %v418_v12 = vpack.c.bf16 %v417_v11, %v417_v11 }
 0x2e3   :  { %495 = vmatmul.bf16.vlgmr.msra.gmra.mxu3 %v418_v12 }
 0x2e4   :  { %v415_v13 = vpop.f32.mrf.mxu2 }
 0x366   :  { %v496_v15 = vpop.f32.mrf.mxu3 }
 0x367   :  { %v497_v17 = vadd.f32 %v730_v14, %v496_v15 }
 0x369   :  { %v507_v18 = vmul.f32 %v505_v16, %v497_v17 }
 0x36b   :  { %508 = vmax.xlane.f32.xlu1 %v507_v18 }
 0x36e   :  { %v498_v19 = vpop.f32.mrf.mxu3 }
 0x3de   :  { %v509_v20 = vpop.xlane.xlu1 %508 }
 0x3df   :  { %v510_v21 = vsub.f32 %v507_v18, %v509_v20 }
 0x3e1   :  { %v511_v22 = vmul.f32 1.442695, %v510_v21 }
 0x3e3   :  { %735 = vpow2.f32 %v511_v22 }
 0x3e9   :  { %v736_v23 = vpop.eup %735 }
 0x3ea   :  { %513 = vadd.xlane.f32.xlu2 %v736_v23 }
 0x45d   :  { %v514_v24 = vpop.xlane.xlu2 %513 }
 0x45e   :  { %737 = vrcp.f32 %v514_v24  ;;  %v526_v28 = vand.u32 2147483648, %v514_v24  ;;  %v524_v30 = vand.u32 2147483647, %v514_v24  ;;  %vm520_vm4 = vweird.f32 %v514_v24 }
 0x460   :  { %v527_v32 = vor.u32 1.1754944e-38, %v526_v28  ;;  %vm525_vm6 = vcmp.eq.f32.partialorder %v524_v30, 8.507059e+37 }
 0x464   :  { %v738_v25 = vpop.eup %737 }
 0x465   :  { %v516_v26 = vmul.f32 %v738_v25, %v514_v24  ;;  %vm521_vm3 = vweird.f32 %v738_v25 }
 0x466   :  { %vm522_vm5 = vmor %vm520_vm4, %vm521_vm3 }
 0x467   :  { %v517_v27 = vsub.f32 1.0, %v516_v26 }
 0x469   :  { %v518_v29 = vmul.f32 %v738_v25, %v517_v27 }
 0x46b   :  { %v519_v31 = vadd.f32 %v738_v25, %v518_v29 }
 0x46d   :  { %v523_v33 = vsel %vm522_vm5, %v738_v25, %v519_v31 }
 0x46e   :  { %v528_v34 = vsel %vm525_vm6, %v527_v32, %v523_v33 }
 0x46f   :  { %v530_v35 = vmul.f32 %v736_v23, %v528_v34 }
 0x471   :  { %531 = vst [vmem:[#allocation14] sm:$0xff] %v530_v35 }
 0x472   :  { %542 = dma.vmem_to_hbm [thread:$0]  %s538_s17, 128, %s540_s18, [#allocation5]  }
 0x473   :  { %915 = dma.done.wait [#allocation5], 128  }
 0x474   :  { %916 = vsyncadd [#allocation5], 4294967168 }
 0x475   :  { %547 = vsyncpa [#allocation4], 1 }
 0x476   :  { %548 = vsyncpa [#allocation7], 1 }
 0x477   :  { %549 = vsyncpa [#allocation10], 1 }
 0x478   :  { %550 = vsyncpa [#allocation13], 1 }
 0x479   :  { %551 = vsyncpa [#allocation5], 1 }

</bundles_post_ra>
